<compile_context>
chip_gen: v6e
topology: v6e:2x2x1
jax: 0.10.0
libtpu: 0.0.40
codegen_flags: <defaults>
</compile_context>

<pallas_src>
import jax
import jax.numpy as jnp
from jax.experimental import pallas as pl
from jax.experimental.pallas import tpu as pltpu

LANE = 128


# ----------------------------- helpers ------------------------------------- #

def _round_up(v, m):
    return (v + m - 1) // m * m


def _pad2d(a, rows, cols):
    return jnp.pad(a, ((0, rows - a.shape[0]), (0, cols - a.shape[1])))


def _choose_row_tile(n_pad):
    # 256-tall row blocks fill v6e/v7x's 2x256^2 MXUs; v5e (4x128^2) is already
    # saturated at 128. Cap double-buffered adj row blocks (2*tm*N_pad*2B) at
    # ~16 MiB so they fit v7x's 64 MiB VMEM with headroom for residents.
    tm = 256 if (n_pad % 256 == 0) else 128
    while tm > 128 and 2 * tm * n_pad * 2 > 16 * 1024 * 1024:
        tm //= 2
    return tm


# ----------------------------- Pallas kernel ------------------------------- #

def _make_fused_gcn_kernel(num_layers, n_pad, row_tile, out_channels):
    """Fused kernel body for grid point (layer l, row block r)."""

    def kernel(adj_ref, x_ref, w_ref, b_ref, o_ref, h_scratch):
        l = pl.program_id(0)                    # layer (outer, sequential)
        r = pl.program_id(1)                    # row block (inner)

        # Ping-pong H buffers inside a flat (2*N_pad, F_pad) bf16 scratch:
        # layer l reads half (l+1)%2 and writes half l%2. X is staged into
        # half 1 once so layer 0 reads it like any other layer input.
        buf_in = jax.lax.rem(l + 1, 2)
        buf_out = jax.lax.rem(l, 2)

        @pl.when(jnp.logical_and(l == 0, r == 0))
        def _():
            h_scratch[n_pad:, :] = x_ref[...]   # static slice: half 1 <- X (bf16)

        adj = adj_ref[...]                      # bf16 (tm, N_pad)
        w = w_ref[...]                          # bf16 (F_pad, F_pad)
        b = b_ref[...]                          # f32  (1, F_pad)

        in_off = pl.multiple_of(buf_in * n_pad, LANE)
        h_in = h_scratch[pl.ds(in_off, n_pad), :]          # bf16 (N_pad, F_pad)

        # (A @ H) @ W: padded feature widths are identical for every layer, so
        # MXU work is the same either way; this order avoids recomputing H @ W
        # for every row block. f32 accumulation on both matmuls.
        ah = jnp.dot(adj, h_in, preferred_element_type=jnp.float32)
        out = jnp.dot(ah.astype(jnp.bfloat16), w,
                      preferred_element_type=jnp.float32)
        out = out + b                                        # bias in f32

        row_start = pl.multiple_of(r * row_tile, LANE)
        is_last = l == num_layers - 1

        @pl.when(jnp.logical_not(is_last))
        def _():
            act = jnp.maximum(out, 0.0)          # ReLU; dropout = identity (eval)
            out_off = pl.multiple_of(buf_out * n_pad + row_start, LANE)
            h_scratch[pl.ds(out_off, row_tile), :] = act.astype(h_scratch.dtype)
            o_ref[...] = act.astype(o_ref.dtype)  # keep output block defined

        @pl.when(is_last)
        def _():
            # Masked log_softmax over dim=1 (padded lanes excluded from max/sum).
            col = jax.lax.broadcasted_iota(jnp.int32, out.shape, 1)
            valid = col < out_channels
            logits = jnp.where(valid, out, jnp.float32(-1e30))
            m = jnp.max(logits, axis=-1, keepdims=True)
            s = logits - m
            p = jnp.where(valid, jnp.exp(s), 0.0)
            lse = jnp.log(jnp.sum(p, axis=-1, keepdims=True))
            o_ref[...] = jnp.where(valid, s - lse, 0.0).astype(o_ref.dtype)

    return kernel


# ------------------------------- wrapper ----------------------------------- #

def gcn_custom_forward(x, adj_norm, params, dropout_ratio=0.0):
    """Fused GCNCustom forward. adj_norm is the precomputed dense A_hat."""
    del dropout_ratio  # eval mode: F.dropout(training=False) is the identity

    n, f_in = x.shape
    num_layers = len(params)
    dims = [f_in] + [w.shape[1] for (w, _) in params]
    out_channels = dims[-1]

    # Uniform feature padding (all layer widths round up to the same lane
    # multiple here); N padded to a multiple of 128 -> lane-dense adj & A@H.
    f_pad = max(_round_up(d, LANE) for d in dims)
    n_pad = _round_up(max(n, LANE), LANE)
    tm = _choose_row_tile(n_pad)
    num_row_blocks = n_pad // tm

    # Host-side padding + bf16 pre-cast for MXU operands; biases stay f32.
    # Padded rows only ever see zero adj columns, so they never leak into the
    # real rows; they are sliced off at the end.
    adj_p = _pad2d(adj_norm.astype(jnp.float32), n_pad, n_pad).astype(jnp.bfloat16)
    x_p = _pad2d(x.astype(jnp.float32), n_pad, f_pad).astype(jnp.bfloat16)
    w_all = jnp.stack([_pad2d(w.astype(jnp.float32), f_pad, f_pad)
                       for (w, _) in params]).astype(jnp.bfloat16)
    b_all = jnp.stack([_pad2d(b.astype(jnp.float32), 1, f_pad)
                       for (_, b) in params])                      # f32

    kernel = _make_fused_gcn_kernel(num_layers, n_pad, tm, out_channels)

    # Explicit VMEM budget (double-buffered blocks + resident scratch) + margin.
    est = (2 * tm * n_pad * 2            # adj row blocks (bf16, 2 buffers)
           + 2 * n_pad * f_pad * 2       # x (resident; budget 2 buffers)
           + 2 * f_pad * f_pad * 2       # per-layer weight block (bf16)
           + 2 * 8 * f_pad * 4           # bias block (f32, sublane padded)
           + 2 * tm * f_pad * 4          # output block (f32)
           + 2 * n_pad * f_pad * 2)      # ping-pong H scratch (bf16)
    vmem_limit = int(min(64 * 1024 * 1024, max(2 * est, 8 * 1024 * 1024)))

    grid_spec = pltpu.PrefetchScalarGridSpec(
        num_scalar_prefetch=0,
        grid=(num_layers, num_row_blocks),
        in_specs=[
            pl.BlockSpec((tm, n_pad), lambda l, r: (r, 0)),            # adj rows
            pl.BlockSpec((n_pad, f_pad), lambda l, r: (0, 0)),         # x resident
            pl.BlockSpec((None, f_pad, f_pad), lambda l, r: (l, 0, 0)),  # W_l
            pl.BlockSpec((None, 1, f_pad), lambda l, r: (l, 0, 0)),      # b_l
        ],
        out_specs=pl.BlockSpec((tm, f_pad), lambda l, r: (r, 0)),
        scratch_shapes=[pltpu.VMEM((2 * n_pad, f_pad), jnp.bfloat16)],
    )

    out_p = pl.pallas_call(
        kernel,
        out_shape=jax.ShapeDtypeStruct((n_pad, f_pad), jnp.float32),
        grid_spec=grid_spec,
        compiler_params=pltpu.CompilerParams(
            # Both axes sequential: layer l+1 reads the full H_l from per-core
            # VMEM scratch, so row blocks cannot be sharded across TCs here.
            dimension_semantics=("arbitrary", "arbitrary"),
            vmem_limit_bytes=vmem_limit,
        ),
    )(adj_p, x_p, w_all, b_all)

    # Slice the lane/sublane padding back off.
    return out_p[:n, :out_channels]


# ------------------------------- JAX glue ---------------------------------- #

def build_norm_adj(edge_index, num_nodes):
    """Dense D^{-1/2}(A + I)D^{-1/2} from an edge_index [2, E] (src, dst)."""
    src, dst = edge_index[0], edge_index[1]
    a = jnp.zeros((num_nodes, num_nodes), jnp.float32)
    a = a.at[dst, src].add(1.0)                      # message j -> i lives at A[i, j]
    a = a + jnp.eye(num_nodes, dtype=jnp.float32)    # self-loops
    deg = jnp.sum(a, axis=1)
    d_inv_sqrt = jnp.where(deg > 0, 1.0 / jnp.sqrt(deg), 0.0)
    return d_inv_sqrt[:, None] * a * d_inv_sqrt[None, :]


def glorot(key, shape):
    fan_in, fan_out = shape
    limit = jnp.sqrt(6.0 / (fan_in + fan_out))
    return jax.random.uniform(key, shape, jnp.float32, -limit, limit)


def init_params(key, in_channels, hidden_channels, out_channels, num_of_layers):
    dims = [in_channels] + [hidden_channels] * (num_of_layers - 1) + [out_channels]
    params = []
    for i in range(num_of_layers):
        key, wk = jax.random.split(key)
        w = glorot(wk, (dims[i], dims[i + 1]))
        b = jnp.zeros((1, dims[i + 1]), jnp.float32)   # PyG GCNConv bias init = zeros
        params.append((w, b))
    return params


def gcn_reference(x, adj_norm, params):
    """Pure-JAX f32 reference of the same forward pass."""
    h = x
    for i, (w, b) in enumerate(params):
        h = adj_norm @ (h @ w) + b
        if i < len(params) - 1:
            h = jnp.maximum(h, 0.0)
    return jax.nn.log_softmax(h, axis=1)


# --------------------------------- main ------------------------------------ #

if __name__ == "__main__":
    key = jax.random.PRNGKey(0)

    num_nodes = 16
    in_channels = 8
    hidden_channels = 32
    out_channels = 6
    num_of_layers = 3
    dropout_ratio = 0.5

    key, xk, pk = jax.random.split(key, 3)
    x = jax.random.normal(xk, (num_nodes, in_channels), jnp.float32)

    # Deterministic graph: bidirectional ring over 16 nodes -> edge_index [2, 32].
    src_fwd = jnp.arange(num_nodes, dtype=jnp.int32)
    dst_fwd = (src_fwd + 1) % num_nodes
    edge_index = jnp.stack(
        [jnp.concatenate([src_fwd, dst_fwd]),
         jnp.concatenate([dst_fwd, src_fwd])], axis=0)

    params = init_params(pk, in_channels, hidden_channels, out_channels, num_of_layers)

    # A_hat depends only on the (static) graph: build once, reuse.
    adj_norm = build_norm_adj(edge_index, num_nodes)

    out = gcn_custom_forward(x, adj_norm, params, dropout_ratio)
    jax.block_until_ready(out)

    assert out.shape == (num_nodes, out_channels)
    assert bool(jnp.all(jnp.isfinite(out)))
    # Rows of log_softmax exponentiate and sum to 1.
    assert bool(jnp.allclose(jnp.sum(jnp.exp(out), axis=1), 1.0, atol=1e-3))
    # bf16 MXU operands + re-associated matmuls -> compare with explicit tolerance.
    ref = gcn_reference(x, adj_norm, params)
    assert bool(jnp.allclose(out, ref, atol=1e-1)), \
        f"max abs err {float(jnp.max(jnp.abs(out - ref)))}"

    print("KERNEL_OK")
</pallas_src>

<mosaic_0001>
module attributes {stable_mosaic.version = 11 : i64} {
  func.func @kernel(%arg0: i32, %arg1: i32, %arg2: memref<128x128xbf16, #tpu.memory_space<vmem>>, %arg3: memref<128x128xbf16, #tpu.memory_space<vmem>>, %arg4: memref<1x128x128xbf16, #tpu.memory_space<vmem>>, %arg5: memref<1x1x128xf32, #tpu.memory_space<vmem>>, %arg6: memref<128x128xf32, #tpu.memory_space<vmem>>, %arg7: memref<256x128xbf16, #tpu.memory_space<vmem>>) attributes {dimension_semantics = [#tpu.dimension_semantics<arbitrary>, #tpu.dimension_semantics<arbitrary>], iteration_bounds = array<i64: 3, 1>, scalar_prefetch = 0 : i64, scratch_operands = 1 : i64, tpu.core_type = #tpu.core_type<tc>, window_params = [{transform_indices = @transform_0, window_bounds = array<i64: 128, 128>}, {pipeline_mode = #tpu.pipeline_mode<synchronous>, transform_indices = @transform_1, window_bounds = array<i64: 128, 128>}, {transform_indices = @transform_2, window_bounds = array<i64: 1, 128, 128>}, {transform_indices = @transform_3, window_bounds = array<i64: 1, 1, 128>}, {transform_indices = @transform_4, window_bounds = array<i64: 128, 128>}]} {
    %c1_i32 = arith.constant 1 : i32
    %0 = arith.addi %arg0, %c1_i32 : i32
    %c2_i32 = arith.constant 2 : i32
    %1 = arith.remsi %0, %c2_i32 : i32
    %c2_i32_0 = arith.constant 2 : i32
    %2 = arith.remsi %arg0, %c2_i32_0 : i32
    %c0_i32 = arith.constant 0 : i32
    %3 = arith.cmpi eq, %arg0, %c0_i32 : i32
    %c0_i32_1 = arith.constant 0 : i32
    %4 = arith.cmpi eq, %arg1, %c0_i32_1 : i32
    %5 = arith.andi %3, %4 : i1
    %6 = arith.extui %5 : i1 to i32
    %c0_i32_2 = arith.constant 0 : i32
    %7 = arith.cmpi ne, %6, %c0_i32_2 : i32
    scf.if %7 {
      %c0_16 = arith.constant 0 : index
      %c0_17 = arith.constant 0 : index
      %30 = vector.load %arg3[%c0_16, %c0_17] : memref<128x128xbf16, #tpu.memory_space<vmem>>, vector<128x128xbf16>
      %c128 = arith.constant 128 : index
      %c0_18 = arith.constant 0 : index
      %31 = vector.load %arg7[%c128, %c0_18] : memref<256x128xbf16, #tpu.memory_space<vmem>>, vector<128x128xbf16>
      tpu.vector_store %arg7[%c128, %c0_18], %30 {strides = array<i32>} : memref<256x128xbf16, #tpu.memory_space<vmem>>, vector<128x128xbf16>,
    } else {
    }
    %c0 = arith.constant 0 : index
    %c0_3 = arith.constant 0 : index
    %8 = vector.load %arg2[%c0, %c0_3] : memref<128x128xbf16, #tpu.memory_space<vmem>>, vector<128x128xbf16>
    %c0_4 = arith.constant 0 : index
    %c0_5 = arith.constant 0 : index
    %c0_6 = arith.constant 0 : index
    %9 = vector.load %arg4[%c0_4, %c0_5, %c0_6] : memref<1x128x128xbf16, #tpu.memory_space<vmem>>, vector<1x128x128xbf16>
    %10 = vector.shape_cast %9 : vector<1x128x128xbf16> to vector<128x128xbf16>
    %c0_7 = arith.constant 0 : index
    %c0_8 = arith.constant 0 : index
    %c0_9 = arith.constant 0 : index
    %11 = vector.load %arg5[%c0_7, %c0_8, %c0_9] : memref<1x1x128xf32, #tpu.memory_space<vmem>>, vector<1x1x128xf32>
    %12 = vector.shape_cast %11 : vector<1x1x128xf32> to vector<1x128xf32>
    %c128_i32 = arith.constant 128 : i32
    %13 = arith.muli %1, %c128_i32 : i32
    %14 = tpu.assume_multiple %13, 128 : i32
    %15 = arith.index_cast %14 : i32 to index
    %c0_10 = arith.constant 0 : index
    %16 = vector.load %arg7[%15, %c0_10] : memref<256x128xbf16, #tpu.memory_space<vmem>>, vector<128x128xbf16>
    %cst = arith.constant dense<0.000000e+00> : vector<128x128xf32>
    %17 = tpu.matmul %8, %16, %cst {dimension_numbers = #tpu.dot_dimension_numbers<[1], [0], [0], [1], [0, 0, 1, 1], [], []>} : vector<128x128xbf16>, vector<128x128xbf16>, vector<128x128xf32> -> vector<128x128xf32>
    %18 = arith.truncf %17 : vector<128x128xf32> to vector<128x128xbf16>
    %cst_11 = arith.constant dense<0.000000e+00> : vector<128x128xf32>
    %19 = tpu.matmul %18, %10, %cst_11 {dimension_numbers = #tpu.dot_dimension_numbers<[1], [0], [0], [1], [0, 0, 1, 1], [], []>} : vector<128x128xbf16>, vector<128x128xbf16>, vector<128x128xf32> -> vector<128x128xf32>
    %20 = vector.broadcast %12 : vector<1x128xf32> to vector<128x128xf32>
    %21 = arith.addf %19, %20 : vector<128x128xf32>
    %c128_i32_12 = arith.constant 128 : i32
    %22 = arith.muli %arg1, %c128_i32_12 : i32
    %23 = tpu.assume_multiple %22, 128 : i32
    %c2_i32_13 = arith.constant 2 : i32
    %24 = arith.cmpi eq, %arg0, %c2_i32_13 : i32
    %true = arith.constant true
    %25 = arith.xori %24, %true : i1
    %26 = arith.extui %25 : i1 to i32
    %c0_i32_14 = arith.constant 0 : i32
    %27 = arith.cmpi ne, %26, %c0_i32_14 : i32
    scf.if %27 {
      %cst_16 = arith.constant 0.000000e+00 : f32
      %30 = vector.broadcast %cst_16 : f32 to vector<128x128xf32>
      %31 = arith.maximumf %21, %30 : vector<128x128xf32>
      %c128_i32_17 = arith.constant 128 : i32
      %32 = arith.muli %2, %c128_i32_17 : i32
      %33 = arith.addi %32, %23 : i32
      %34 = tpu.assume_multiple %33, 128 : i32
      %35 = arith.truncf %31 : vector<128x128xf32> to vector<128x128xbf16>
      %36 = arith.index_cast %34 : i32 to index
      %c0_18 = arith.constant 0 : index
      %37 = vector.load %arg7[%36, %c0_18] : memref<256x128xbf16, #tpu.memory_space<vmem>>, vector<128x128xbf16>
      tpu.vector_store %arg7[%36, %c0_18], %35 {strides = array<i32>} : memref<256x128xbf16, #tpu.memory_space<vmem>>, vector<128x128xbf16>,
      %c0_19 = arith.constant 0 : index
      %c0_20 = arith.constant 0 : index
      %38 = vector.load %arg6[%c0_19, %c0_20] : memref<128x128xf32, #tpu.memory_space<vmem>>, vector<128x128xf32>
      tpu.vector_store %arg6[%c0_19, %c0_20], %31 {strides = array<i32>} : memref<128x128xf32, #tpu.memory_space<vmem>>, vector<128x128xf32>,
    } else {
    }
    %28 = arith.extui %24 : i1 to i32
    %c0_i32_15 = arith.constant 0 : i32
    %29 = arith.cmpi ne, %28, %c0_i32_15 : i32
    scf.if %29 {
      %30 = tpu.iota {dimensions = array<i32: 1>} : vector<128x128xi32>
      %c6_i32 = arith.constant 6 : i32
      %31 = vector.broadcast %c6_i32 : i32 to vector<128x128xi32>
      %32 = arith.cmpi slt, %30, %31 : vector<128x128xi32>
      %cst_16 = arith.constant -1.000000e+30 : f32
      %33 = vector.broadcast %cst_16 : f32 to vector<128x128xf32>
      %34 = arith.select %32, %21, %33 : vector<128x128xi1>, vector<128x128xf32>
      %cst_17 = arith.constant dense<0xFF800000> : vector<128xf32>
      %35 = vector.multi_reduction <maximumf>, %34, %cst_17 [1] : vector<128x128xf32> to vector<128xf32>
      %36 = vector.shape_cast %35 : vector<128xf32> to vector<128x1xf32>
      %37 = vector.broadcast %36 : vector<128x1xf32> to vector<128x128xf32>
      %38 = arith.subf %34, %37 : vector<128x128xf32>
      %39 = math.exp %38 : vector<128x128xf32>
      %cst_18 = arith.constant 0.000000e+00 : f32
      %40 = vector.broadcast %cst_18 : f32 to vector<128x128xf32>
      %41 = arith.select %32, %39, %40 : vector<128x128xi1>, vector<128x128xf32>
      %cst_19 = arith.constant dense<0.000000e+00> : vector<128xf32>
      %42 = vector.multi_reduction <add>, %41, %cst_19 [1] : vector<128x128xf32> to vector<128xf32>
      %43 = vector.shape_cast %42 : vector<128xf32> to vector<128x1xf32>
      %44 = math.log %43 : vector<128x1xf32>
      %45 = vector.broadcast %44 : vector<128x1xf32> to vector<128x128xf32>
      %46 = arith.subf %38, %45 : vector<128x128xf32>
      %cst_20 = arith.constant 0.000000e+00 : f32
      %47 = vector.broadcast %cst_20 : f32 to vector<128x128xf32>
      %48 = arith.select %32, %46, %47 : vector<128x128xi1>, vector<128x128xf32>
      %c0_21 = arith.constant 0 : index
      %c0_22 = arith.constant 0 : index
      %49 = vector.load %arg6[%c0_21, %c0_22] : memref<128x128xf32, #tpu.memory_space<vmem>>, vector<128x128xf32>
      tpu.vector_store %arg6[%c0_21, %c0_22], %48 {strides = array<i32>} : memref<128x128xf32, #tpu.memory_space<vmem>>, vector<128x128xf32>,
    } else {
    }
    return
  }
  func.func @transform_0(%arg0: i32, %arg1: i32) -> (i32, i32) {
    %c0_i32 = arith.constant 0 : i32
    %c0_i32_0 = arith.constant 0 : i32
    return %arg1, %c0_i32 : i32, i32
  }
  func.func @transform_1(%arg0: i32, %arg1: i32) -> (i32, i32) {
    %c0_i32 = arith.constant 0 : i32
    %c0_i32_0 = arith.constant 0 : i32
    %c0_i32_1 = arith.constant 0 : i32
    return %c0_i32, %c0_i32_0 : i32, i32
  }
  func.func @transform_2(%arg0: i32, %arg1: i32) -> (i32, i32, i32) {
    %c0_i32 = arith.constant 0 : i32
    %c0_i32_0 = arith.constant 0 : i32
    %c0_i32_1 = arith.constant 0 : i32
    return %arg0, %c0_i32, %c0_i32_0 : i32, i32, i32
  }
  func.func @transform_3(%arg0: i32, %arg1: i32) -> (i32, i32, i32) {
    %c0_i32 = arith.constant 0 : i32
    %c0_i32_0 = arith.constant 0 : i32
    %c0_i32_1 = arith.constant 0 : i32
    return %arg0, %c0_i32, %c0_i32_0 : i32, i32, i32
  }
  func.func @transform_4(%arg0: i32, %arg1: i32) -> (i32, i32) {
    %c0_i32 = arith.constant 0 : i32
    %c0_i32_0 = arith.constant 0 : i32
    return %arg1, %c0_i32 : i32, i32
  }
}

</mosaic_0001>

<bundles_post_ra>
// kernel: tpu_custom_call.1
= control target key start
LH: loop header
LB: loop body
LE: loop exit
PB: predicated region body
PF: predicated region fallthrough
CT: control target
= control target key end

     0   :  { %9 = vsyncpa [#allocation4], 0  ;;  %s2233_s0 = inlined_call_operand.hbm [shape: bf16[128,128], index: 0, kind: input, shape index: {}]   ;;  %s2234_s1 = inlined_call_operand.hbm [shape: bf16[128,128], index: 1, kind: input, shape index: {}]   ;;  %s2235_s2 = inlined_call_operand.hbm [shape: bf16[3,128,128], index: 2, kind: input, shape index: {}]   ;;  %s2236_s3 = inlined_call_operand.vmem [shape: f32[3,1,128], index: 3, kind: input, shape index: {}]   ;;  %s2237_s4 = inlined_call_operand.hbm [shape: f32[128,128], index: 4, kind: output, shape index: {}]  }
   0x1   :  { %10 = vsyncpa [#allocation7], 0 }
   0x2   :  { %11 = vsyncpa [#allocation5], 0  ;;  %s1794_s15 = smov 0   ;;  %s1796_s16 = smov 0  }
   0x3   :  { %s1798_s17 = smov 0   ;;  %s1800_s18 = smov 0  }
   0x4   :  { %s1802_s19 = smov 0   ;;  %s1804_s20 = smov 0  }
   0x5 LB: > { %s1823_s21 = sadd.s32 4294967295, %s1759_s20   ;;  %p90_p0 = scmp.ne.s32.totalorder %s1747_s17, %s1743_s16  ;;  %s1759_s20 = sphi %s1804_s20, %s17_s20   ;;  %s1755_s19 = sphi %s1802_s19, %s2253_s19   ;;  %s1751_s18 = sphi %s1800_s18, %s2252_s18   ;;  %s1747_s17 = sphi %s1798_s17, %s2251_s17   ;;  %s1743_s16 = sphi %s1796_s16, %s2250_s16   ;;  %s1739_s15 = sphi %s1794_s15, %s2249_s15  }
   0x6   : > { %p91_p1 = scmp.eq.s32.totalorder %s1759_s20, 0  ;;  %p96_p2 = scmp.ne.s32.totalorder %s1743_s16, %s1739_s15 }
   0x7   : > { %p2238_p3 = scmp.eq.s32.totalorder %s1823_s21, 0  ;;  %p1192_p4 = scmp.ge.s32.totalorder %s1759_s20, 1 }
   0x8   : > { %p92_p5 = por %p91_p1, %p90_p0  ;;  %p159_p6 = scmp.lt.s32.totalorder %s1759_s20, 4 }
   0x9   : > { %p1834_p7 = por %p2238_p3, %p96_p2  ;;  %s1761_s24 = smov [#allocation3]  }
   0xa   : > { %p1838_p8 = pnand %p1192_p4, %p159_p6  ;;  %s174_s25 = sshll.u32 %s1761_s24, 4  ;;  %s175_s25 = int_to_ptr.vmem [resolvable:$true] %s174_s25 }
   0xb   : > { %p1445_p11 = scmp.lt.s32.totalorder %s1759_s20, 3  ;;  %s1604_s28 = scalar_lea.vmem %s175_s25, 1024 }
   0xc   : > { %p1432_p9 = pneg %p1838_p8  ;;  %p1605_p0 = scmp.ne.s32.totalorder %s175_s25, %s1604_s28 }
   0xd   : > { %p1851_p12 = pnand %p1445_p11, %p92_p5  ;;  %p1612_p4 = scmp.lt.s32.totalorder %s175_s25, %s175_s25 }
   0xe   : > { %p1846_p10 = pnand %p1432_p9, %p2238_p3  ;;  %p1613_p6 = scmp.lt.s32.totalorder %s1604_s28, %s1604_s28 }
  0x10   : > { %p1595_p13 = pneg %p1846_p10  ;;  %p1614_p9 = por %p1613_p6, %p1612_p4 }
  0x12   : > { %p1607_p1 = pnand %p1605_p0, %p1595_p13 }
  0x14   : > { %p1608_p2 = pneg %p1607_p1 }
  0x16   : > { %p1615_p3 = pnand %p1614_p9, %p1608_p2 }
  0x18   : > { %1618 = shalt.err (!%p1615_p3)
}
  0x19   : > { %s2239_s29 = smov 64   ;;  %s1763_s30 = smov 4  }
  0x1a   : > { %1435 = dma.hbm_to_vmem [thread:$0]  (!%p1846_p10), %s2233_s0, 1024, %s175_s25, [#allocation4], %s2239_s29, %s2239_s29, %s1763_s30  }
  0x1b   : > { %s1764_s7 = smov [#allocation6]  }
  0x1c   : > { %s187_s8 = sshll.u32 %s1764_s7, 4  ;;  %s188_s8 = int_to_ptr.vmem [resolvable:$true] %s187_s8 }
  0x1d   : > { %s1630_s9 = scalar_lea.vmem %s188_s8, 1024  ;;  %p1638_p0 = scmp.lt.s32.totalorder %s188_s8, %s188_s8 }
  0x1e   : > { %p1631_p5 = scmp.ne.s32.totalorder %s188_s8, %s1630_s9  ;;  %p1639_p1 = scmp.lt.s32.totalorder %s1630_s9, %s1630_s9 }
  0x20   : > { %p1633_p3 = pnand %p1631_p5, %p1595_p13  ;;  %p1640_p2 = por %p1639_p1, %p1638_p0 }
  0x22   : > { %p1634_p11 = pneg %p1633_p3 }
  0x24   : > { %p1641_p4 = pnand %p1640_p2, %p1634_p11 }
  0x26   : > { %1644 = shalt.err (!%p1641_p4)
}
  0x27   : > { %1438 = dma.hbm_to_vmem [thread:$0]  (!%p1846_p10), %s2234_s1, 1024, %s188_s8, [#allocation7], %s2239_s29, %s2239_s29, %s1763_s30  }
  0x28   : > { %s29_s12 = sadd.s32 1, %s1755_s19  ;;  %s83_s13 = sadd.s32 1, %s1747_s17 }
  0x29   : > { %p31_p13 = scmp.ge.s32.totalorder %s29_s12, 3  ;;  %s201_s14 = sand.u32 1, %s1759_s20  }
  0x2a   : > { %s203_s15 = sand.u32 1, %s1747_s17   ;;  %s1257_s25 = sshll.u32 %s1755_s19, 10 }
  0x2b   : > { %s2255_s12 = smov (%p31_p13, %s29_s12), 0  ;;  %s1196_s24 = sshll.u32 %s203_s15, 6 }
  0x2c   : > { %s80_s26 = ssub.s32 %s1755_s19, %s2255_s12  ;;  %s211_s6 = scalar_lea.hbm %s2235_s2, %s1257_s25 }
  0x2d   : > { %p81_p6 = scmp.eq.s32.totalorder %s80_s26, 0  ;;  %s205_s7 = scalar_lea.vmem [#allocation8], %s1196_s24 }
  0x2e   : > { %s212_s9 = sshll.u32 %s205_s7, 4  ;;  %s202_s10 = scalar_lea.sflag [#allocation4], %s201_s14  ;;  %s213_s9 = int_to_ptr.vmem [resolvable:$true] %s212_s9 }
  0x2f   : > { %s1892_s8 = scalar_select %p81_p6, %s1747_s17, %s83_s13  }
  0x30   : > { %p1647_p10 = pneg %p1851_p12  ;;  %s1658_s11 = scalar_lea.vmem %s213_s9, 1024 }
  0x31   : > { %p1659_p9 = scmp.ne.s32.totalorder %s213_s9, %s1658_s11  ;;  %s1765_s15 = smov [#allocation8]  }
  0x32   : > { %s1663_s29 = sshll.u32 %s1765_s15, 4  ;;  %s1664_s29 = int_to_ptr.vmem [resolvable:$false] %s1663_s29 }
  0x33   : > { %p1661_p5 = pnand %p1659_p9, %p1647_p10  ;;  %s1665_s26 = scalar_lea.vmem %s1664_s29, 2048 }
  0x34   : > { %p1666_p11 = scmp.lt.s32.totalorder %s213_s9, %s1664_s29  ;;  %p1667_p0 = scmp.lt.s32.totalorder %s1665_s26, %s1658_s11 }
  0x35   : > { %p1662_p3 = pneg %p1661_p5 }
  0x36   : > { %p1668_p1 = por %p1667_p0, %p1666_p11 }
  0x38   : > { %p1669_p2 = pnand %p1668_p1, %p1662_p3 }
  0x3a   : > { %1672 = shalt.err (!%p1669_p2)
}
  0x3b   : > { %s2244_s13 = smov 64   ;;  %230 = sbr.rel (%p1838_p8) target bundleno = 940 (0x3ac), region = 36 }
  0x3c   : > { %1442 = dma.hbm_to_vmem [thread:$0]  (!%p1851_p12), %s211_s6, 1024, %s213_s9, %s202_s10, %s2244_s13, %s2244_s13, %s1763_s30  }
  0x3d   : > { %p2245_p4 = scmp.eq.s32.totalorder (!%p1838_p8), %s1823_s21, 0 }
  0x40   : > { %1722 = dma.done.wait (%p2245_p4), [#allocation4], 1024   ;;  %p2246_p13 = pmov %p2245_p4 }
  0x41   : > { %p2247_p6 = pmov %p2245_p4 }
  0x42   : > { %1724 = vsyncadd (%p2246_p13), [#allocation4], 4294966272 }
  0x43   : > { %1726 = dma.done.wait (%p2247_p6), [#allocation7], 1024   ;;  %p2248_p10 = pmov %p2245_p4 }
  0x44   : > { %s240_s27 = sand.u32 1, %s1823_s21   ;;  %s242_s29 = sand.u32 1, %s1743_s16  }
  0x45   : > { %1728 = vsyncadd (%p2248_p10), [#allocation7], 4294966272  ;;  %s1202_s30 = sshll.u32 %s242_s29, 6  ;;  %s241_s23 = scalar_lea.sflag [#allocation4], %s240_s27 }
  0x46   : > { %s1913_s14 = scalar_lea.vmem [#allocation8], %s1202_s30 }
  0x47   : > { %1730 = dma.done.wait (%p1834_p7), %s241_s23, 1024  }
  0x48   : > { %1732 = vsyncadd (%p1834_p7), %s241_s23, 4294966272  ;;  %p268_p8 = scmp.lt.s32.totalorder %s1751_s18, 2  ;;  %s273_s24 = sadd.s32 1, %s1751_s18 }
  0x49   : > { %p274_p12 = scmp.lt.s32.totalorder %s273_s24, 0  ;;  %s275_s25 = ssub.s32 0, %s273_s24 }
  0x4a   : > { %s1922_s28 = scalar_select %p268_p8, %s1751_s18, 2 }
  0x4b   : > { %s1203_s5 = smin.u32 %s275_s25, %s273_s24  ;;  %p280_p9 = scmp.lt.s32.totalorder %s1751_s18, 0 }
  0x4c   : > { %s270_s22 = scalar_lea.vmem %s2236_s3, %s1922_s28  ;;  %s277_s9 = sand.u32 1, %s1203_s5  }
  0x4d   : > { %s278_s10 = ssub.s32 0, %s277_s9  ;;  %s281_s11 = ssub.s32 0, %s1751_s18 }
  0x4e   : > { %s2257_s10 = smov (!%p274_p12, %s278_s10), %s277_s9  ;;  %s1204_s15 = smin.u32 %s1751_s18, %s281_s11 }
  0x4f   : > { %p286_p7 = scmp.eq.s32.totalorder %s1751_s18, 0  ;;  %s283_s26 = sand.u32 1, %s1204_s15  }
  0x50   : > { %s284_s13 = ssub.s32 0, %s283_s26  ;;  %v292_v0 = vld [vmem:[#allocation6] sm:$0xff] (%p286_p7)   ;;  %v294_v1 = vld [vmem:[#allocation6 + $0x8] sm:$0xff] (%p286_p7)   ;;  %v296_v2 = vld [vmem:[#allocation6 + $0x10] sm:$0xff] (%p286_p7)  }
  0x51   : > { %s2259_s13 = smov (!%p280_p9, %s284_s13), %s283_s26  ;;  %291 = sbr.rel (!%p286_p7) target bundleno = 86 (0x56), region = 52  ;;  %308 = vst [vmem:[#allocation2 + $0x40] sm:$0xff] (%p286_p7), %v292_v0   ;;  %310 = vst [vmem:[#allocation2 + $0x48] sm:$0xff] (%p286_p7), %v294_v1   ;;  %v298_v3 = vld [vmem:[#allocation6 + $0x18] sm:$0xff] (%p286_p7)   ;;  %v300_v4 = vld [vmem:[#allocation6 + $0x20] sm:$0xff] (%p286_p7)  }
  0x52   : > { %312 = vst [vmem:[#allocation2 + $0x50] sm:$0xff] (%p286_p7), %v296_v2   ;;  %v302_v5 = vld [vmem:[#allocation6 + $0x28] sm:$0xff] (%p286_p7)   ;;  %314 = vst [vmem:[#allocation2 + $0x58] sm:$0xff] (%p286_p7), %v298_v3   ;;  %v304_v6 = vld [vmem:[#allocation6 + $0x30] sm:$0xff] (%p286_p7)  }
  0x53   : > { %316 = vst [vmem:[#allocation2 + $0x60] sm:$0xff] (%p286_p7), %v300_v4   ;;  %318 = vst [vmem:[#allocation2 + $0x68] sm:$0xff] (%p286_p7), %v302_v5   ;;  %v306_v7 = vld [vmem:[#allocation6 + $0x38] sm:$0xff] (%p286_p7)  }
  0x54   : > { %320 = vst [vmem:[#allocation2 + $0x70] sm:$0xff] (%p286_p7), %v304_v6   ;;  %322 = vst [vmem:[#allocation2 + $0x78] sm:$0xff] (%p286_p7), %v306_v7  }
  0x56 PF: > { %s1206_s27 = sshll.u32 %s2257_s10, 7  ;;  %v1513_v8 = vld [vmem:[#allocation3] sm:$0xff]   ;;  %v1521_v14 = vld [vmem:[%s1913_s14 + $0x38] sm:$0xff]   ;;  %v1522_v15 = vld [vmem:[%s1913_s14 + $0x30] sm:$0xff]   ;;  %p1233_p5 = scmp.eq.s32.totalorder %s1751_s18, 2 }
  0x57   : > { %s358_s29 = sshra.s32 %s1206_s27, 3  ;;  %1370 = vmatprep.mubr.bf16.mxu0 %v1513_v8  ;;  %1386 = vmatprep.subr.bf16.mxu1 %v1521_v14  ;;  %v1523_v17 = vld [vmem:[%s1913_s14 + $0x28] sm:$0xff]   ;;  %v1524_v19 = vld [vmem:[%s1913_s14 + $0x20] sm:$0xff]   ;;  %v1525_v21 = vld [vmem:[%s1913_s14 + $0x18] sm:$0xff]   ;;  %s1234_s25 = sshll.u32 (!%p1233_p5), %s2259_s13, 7 }
  0x58   : > { %s1207_s30 = sshll.u32 %s358_s29, 2  ;;  %1387 = vmatpush3.bf16.msra.mxu1 %v1521_v14  ;;  %v1526_v22 = vld [vmem:[%s1913_s14 + $0x10] sm:$0xff]   ;;  %v1514_v23 = vld [vmem:[#allocation3 + $0x8] sm:$0xff]   ;;  %v1516_v25 = vld [vmem:[#allocation3 + $0x18] sm:$0xff]   ;;  %s818_s28 = sshra.s32 (!%p1233_p5), %s1234_s25, 3 }
  0x59   : > { %s1934_s23 = scalar_lea.vmem [#allocation2], %s1207_s30  ;;  %1388 = vmatprep.subr.bf16.mxu1 %v1522_v15  ;;  %v1515_v24 = vld [vmem:[#allocation3 + $0x10] sm:$0xff]   ;;  %v1517_v26 = vld [vmem:[#allocation3 + $0x20] sm:$0xff]   ;;  %v1518_v27 = vld [vmem:[#allocation3 + $0x28] sm:$0xff]   ;;  %s1251_s5 = sshll.u32 (!%p1233_p5), %s818_s28, 2 }
  0x5a   : > { %v1519_v28 = vld [vmem:[#allocation3 + $0x30] sm:$0xff]   ;;  %v1520_v29 = vld [vmem:[#allocation3 + $0x38] sm:$0xff]   ;;  %v1527_v30 = vld [vmem:[%s1913_s14 + $0x8] sm:$0xff]   ;;  %s821_s6 = scalar_lea.vmem (!%p1233_p5), [#allocation2], %s1251_s5 }
  0x5b   : > { %v1505_v9 = vld [vmem:[%s1934_s23 + $0x38] sm:$0xff]   ;;  %v1506_v10 = vld [vmem:[%s1934_s23 + $0x30] sm:$0xff]   ;;  %v1507_v11 = vld [vmem:[%s1934_s23 + $0x28] sm:$0xff]  }
  0x5c   : > { %1354 = vmatprep.subr.bf16.mxu0 %v1505_v9  ;;  %v1508_v12 = vld [vmem:[%s1934_s23 + $0x20] sm:$0xff]   ;;  %v1509_v13 = vld [vmem:[%s1934_s23 + $0x18] sm:$0xff]   ;;  %v1510_v16 = vld [vmem:[%s1934_s23 + $0x10] sm:$0xff]   ;;  %1389 = vmatpush3.bf16.msra.mxu1 %v1522_v15 }
  0x5d   : > { %1355 = vmatpush3.bf16.msra.mxu0 %v1505_v9  ;;  %v1511_v18 = vld [vmem:[%s1934_s23 + $0x8] sm:$0xff]   ;;  %1390 = vmatprep.subr.bf16.mxu1 %v1523_v17  ;;  %v1512_v20 = vld [vmem:[%s1934_s23] sm:$0xff]  }
  0x5e   : > { %1356 = vmatprep.subr.bf16.mxu0 %v1506_v10  ;;  %v1528_v31 = vld [vmem:[%s1913_s14] sm:$0xff]  }
  0x5f   : > { %v1224_v56 = vld [vmem:[%s270_s22] ss:$0 sm:$0xff] }
  0x60   : > { %1391 = vmatpush3.bf16.msra.mxu1 %v1523_v17 }
  0x61   : > { %1357 = vmatpush3.bf16.msra.mxu0 %v1506_v10  ;;  %1392 = vmatprep.subr.bf16.mxu1 %v1524_v19 }
  0x62   : > { %1358 = vmatprep.subr.bf16.mxu0 %v1507_v11 }
  0x64   : > { %1393 = vmatpush3.bf16.msra.mxu1 %v1524_v19 }
  0x65   : > { %1359 = vmatpush3.bf16.msra.mxu0 %v1507_v11  ;;  %1394 = vmatprep.subr.bf16.mxu1 %v1525_v21 }
  0x66   : > { %1360 = vmatprep.subr.bf16.mxu0 %v1508_v12 }
  0x68   : > { %1395 = vmatpush3.bf16.msra.mxu1 %v1525_v21 }
  0x69   : > { %1361 = vmatpush3.bf16.msra.mxu0 %v1508_v12  ;;  %1396 = vmatprep.subr.bf16.mxu1 %v1526_v22 }
  0x6a   : > { %1362 = vmatprep.subr.bf16.mxu0 %v1509_v13 }
  0x6c   : > { %1397 = vmatpush3.bf16.msra.mxu1 %v1526_v22 }
  0x6d   : > { %1363 = vmatpush3.bf16.msra.mxu0 %v1509_v13  ;;  %1398 = vmatprep.subr.bf16.mxu1 %v1527_v30 }
  0x6e   : > { %1364 = vmatprep.subr.bf16.mxu0 %v1510_v16 }
  0x70   : > { %1399 = vmatpush3.bf16.msra.mxu1 %v1527_v30 }
  0x71   : > { %1365 = vmatpush3.bf16.msra.mxu0 %v1510_v16  ;;  %1400 = vmatprep.subr.bf16.mxu1 %v1528_v31 }
  0x72   : > { %1366 = vmatprep.subr.bf16.mxu0 %v1511_v18 }
  0x74   : > { %1401 = vmatpush3.bf16.msra.mxu1 %v1528_v31 }
  0x75   : > { %1367 = vmatpush3.bf16.msra.mxu0 %v1511_v18 }
  0x76   : > { %1368 = vmatprep.subr.bf16.mxu0 %v1512_v20 }
  0x79   : > { %1369 = vmatpush3.bf16.msra.mxu0 %v1512_v20 }
  0x7c   : > { %1371 = vmatmul.mubr.bf16.vlgmr.msra.gmra.mxu0 %v1514_v23 }
  0x7d   : > { %1374 = vmatprep.mubr.bf16.mxu0 %v1515_v24 }
  0x84   : > { %1375 = vmatmul.mubr.bf16.gmra.mxu0 %v1516_v25 }
  0x85   : > { %1378 = vmatprep.mubr.bf16.mxu0 %v1517_v26 }
  0x8c   : > { %1379 = vmatmul.mubr.bf16.gmra.mxu0 %v1518_v27 }
  0x8d   : > { %1382 = vmatprep.mubr.bf16.mxu0 %v1519_v28 }
  0x94   : > { %1383 = vmatmul.mubr.bf16.gmra.mxu0 %v1520_v29 }
 0x13c   : > { %v1372_v32 = vpop.f32.mrf.mxu0 }
 0x13e   : > { %v508_v33 = vpop.f32.mrf.mxu0 }
 0x140   : > { %v1373_v34 = vpop.f32.mrf.mxu0 }
 0x141   : > { %v572_v37 = vpack.c.bf16 %v1373_v34, %v1372_v32 }
 0x142   : > { %v511_v35 = vpop.f32.mrf.mxu0 }
 0x143   : > { %v571_v36 = vpack.c.bf16 %v511_v35, %v508_v33 }
 0x144   : > { %v1376_v38 = vpop.f32.mrf.mxu0 }
 0x145   : > { %1402 = vmatprep.mubr.bf16.mxu1 %v571_v36 }
 0x146   : > { %v524_v39 = vpop.f32.mrf.mxu0  ;;  %1403 = vmatmul.mubr.bf16.vlgmr.msra.gmra.mxu1 %v572_v37 }
 0x148   : > { %v1377_v40 = vpop.f32.mrf.mxu0 }
 0x149   : > { %v574_v43 = vpack.c.bf16 %v1377_v40, %v1376_v38 }
 0x14a   : > { %v527_v41 = vpop.f32.mrf.mxu0 }
 0x14b   : > { %v573_v42 = vpack.c.bf16 %v527_v41, %v524_v39 }
 0x14c   : > { %v1380_v44 = vpop.f32.mrf.mxu0 }
 0x14d   : > { %1406 = vmatprep.mubr.bf16.mxu1 %v573_v42 }
 0x14e   : > { %v540_v45 = vpop.f32.mrf.mxu0  ;;  %1407 = vmatmul.mubr.bf16.gmra.mxu1 %v574_v43 }
 0x150   : > { %v1381_v46 = vpop.f32.mrf.mxu0 }
 0x151   : > { %v576_v49 = vpack.c.bf16 %v1381_v46, %v1380_v44 }
 0x152   : > { %v543_v47 = vpop.f32.mrf.mxu0 }
 0x153   : > { %v575_v48 = vpack.c.bf16 %v543_v47, %v540_v45 }
 0x154   : > { %v1384_v50 = vpop.f32.mrf.mxu0 }
 0x155   : > { %1410 = vmatprep.mubr.bf16.mxu1 %v575_v48 }
 0x156   : > { %v556_v51 = vpop.f32.mrf.mxu0  ;;  %1411 = vmatmul.mubr.bf16.gmra.mxu1 %v576_v49 }
 0x158   : > { %v1385_v52 = vpop.f32.mrf.mxu0 }
 0x159   : > { %v578_v55 = vpack.c.bf16 %v1385_v52, %v1384_v50 }
 0x15a   : > { %v559_v53 = vpop.f32.mrf.mxu0 }
 0x15b   : > { %v577_v54 = vpack.c.bf16 %v559_v53, %v556_v51 }
 0x15d   : > { %1414 = vmatprep.mubr.bf16.mxu1 %v577_v54 }
 0x15e   : > { %1415 = vmatmul.mubr.bf16.gmra.mxu1 %v578_v55 }
 0x206   : > { %v1404_v57 = vpop.f32.mrf.mxu1 }
 0x207   : > { %v1957_v58 = vadd.f32 %v1404_v57, %v1224_v56 }
 0x208   : > { %v667_v59 = vpop.f32.mrf.mxu1 }
 0x209   : > { %v1959_v60 = vadd.f32 %v1224_v56, %v667_v59 }
 0x20a   : > { %v1405_v61 = vpop.f32.mrf.mxu1 }
 0x20b   : > { %v1961_v62 = vadd.f32 %v1405_v61, %v1224_v56 }
 0x20c   : > { %v670_v63 = vpop.f32.mrf.mxu1 }
 0x20d   : > { %v1963_v0 = vadd.f32 %v1224_v56, %v670_v63 }
 0x20e   : > { %v1408_v1 = vpop.f32.mrf.mxu1 }
 0x20f   : > { %v1965_v2 = vadd.f32 %v1408_v1, %v1224_v56 }
 0x210   : > { %v683_v3 = vpop.f32.mrf.mxu1 }
 0x211   : > { %v1967_v4 = vadd.f32 %v1224_v56, %v683_v3 }
 0x212   : > { %v1409_v5 = vpop.f32.mrf.mxu1 }
 0x213   : > { %v1969_v6 = vadd.f32 %v1409_v5, %v1224_v56 }
 0x214   : > { %v686_v7 = vpop.f32.mrf.mxu1 }
 0x215   : > { %v1971_v8 = vadd.f32 %v1224_v56, %v686_v7 }
 0x216   : > { %v1412_v9 = vpop.f32.mrf.mxu1 }
 0x217   : > { %v1973_v10 = vadd.f32 %v1412_v9, %v1224_v56 }
 0x218   : > { %v699_v11 = vpop.f32.mrf.mxu1 }
 0x219   : > { %v1975_v12 = vadd.f32 %v1224_v56, %v699_v11 }
 0x21a   : > { %v1413_v13 = vpop.f32.mrf.mxu1 }
 0x21b   : > { %v1977_v14 = vadd.f32 %v1413_v13, %v1224_v56 }
 0x21c   : > { %v702_v15 = vpop.f32.mrf.mxu1 }
 0x21d   : > { %v1979_v16 = vadd.f32 %v1224_v56, %v702_v15 }
 0x21e   : > { %v1416_v17 = vpop.f32.mrf.mxu1 }
 0x21f   : > { %v1981_v18 = vadd.f32 %v1416_v17, %v1224_v56 }
 0x220   : > { %v715_v19 = vpop.f32.mrf.mxu1 }
 0x221   : > { %v1983_v20 = vadd.f32 %v1224_v56, %v715_v19  ;;  %735 = sbr.rel (%p1233_p5) target bundleno = 564 (0x234), region = 56 }
 0x222   : > { %v1417_v21 = vpop.f32.mrf.mxu1 }
 0x223   : > { %v1985_v22 = vadd.f32 %v1417_v21, %v1224_v56 }
 0x224   : > { %v718_v23 = vpop.f32.mrf.mxu1 }
 0x225   : > { %v1987_v24 = vadd.f32 %v1224_v56, %v718_v23 }
 0x226   : > { %v736_v25 = vmax.f32 %v1959_v60, 0.0  ;;  %v737_v26 = vmax.f32 %v1963_v0, 0.0  ;;  %v738_v27 = vmax.f32 %v1957_v58, 0.0  ;;  %v739_v28 = vmax.f32 %v1961_v62, 0.0 }
 0x227   : > { %v740_v29 = vmax.f32 %v1967_v4, 0.0  ;;  %v741_v30 = vmax.f32 %v1971_v8, 0.0  ;;  %v742_v31 = vmax.f32 %v1965_v2, 0.0  ;;  %v743_v32 = vmax.f32 %v1969_v6, 0.0 }
 0x228   : > { %v1278_v33 = vpack.c.bf16 %v737_v26, %v736_v25  ;;  %838 = vst [vmem:[#allocation9] sm:$0xff] %v736_v25  ;;  %839 = vst [vmem:[#allocation9 + $0x8] sm:$0xff] %v737_v26  ;;  %v1283_v34 = vpack.c.bf16 %v739_v28, %v738_v27  ;;  %v744_v35 = vmax.f32 %v1975_v12, 0.0  ;;  %v745_v36 = vmax.f32 %v1979_v16, 0.0 }
 0x229   : > { %840 = vst [vmem:[#allocation9 + $0x10] sm:$0xff] %v738_v27  ;;  %841 = vst [vmem:[#allocation9 + $0x18] sm:$0xff] %v739_v28  ;;  %v1288_v37 = vpack.c.bf16 %v741_v30, %v740_v29  ;;  %v1293_v38 = vpack.c.bf16 %v743_v32, %v742_v31  ;;  %v746_v39 = vmax.f32 %v1973_v10, 0.0  ;;  %v747_v40 = vmax.f32 %v1977_v14, 0.0 }
 0x22a   : > { %842 = vst [vmem:[#allocation9 + $0x20] sm:$0xff] %v740_v29  ;;  %843 = vst [vmem:[#allocation9 + $0x28] sm:$0xff] %v741_v30  ;;  %v1298_v41 = vpack.c.bf16 %v745_v36, %v744_v35  ;;  %v748_v42 = vmax.f32 %v1983_v20, 0.0  ;;  %v749_v43 = vmax.f32 %v1987_v24, 0.0  ;;  %v750_v44 = vmax.f32 %v1981_v18, 0.0 }
 0x22b   : > { %844 = vst [vmem:[#allocation9 + $0x30] sm:$0xff] %v742_v31  ;;  %845 = vst [vmem:[#allocation9 + $0x38] sm:$0xff] %v743_v32  ;;  %v1303_v45 = vpack.c.bf16 %v747_v40, %v746_v39  ;;  %v751_v46 = vmax.f32 %v1985_v22, 0.0 }
 0x22c   : > { %1279 = vst [vmem:[%s821_s6] sm:$0xff] %v1278_v33   ;;  %1315 = vst [vmem:[%s821_s6 + $0x8] sm:$0xff] %v1283_v34   ;;  %v1308_v47 = vpack.c.bf16 %v749_v43, %v748_v42 }
 0x22d   : > { %846 = vst [vmem:[#allocation9 + $0x40] sm:$0xff] %v744_v35  ;;  %847 = vst [vmem:[#allocation9 + $0x48] sm:$0xff] %v745_v36  ;;  %v1313_v48 = vpack.c.bf16 %v751_v46, %v750_v44 }
 0x22e   : > { %1316 = vst [vmem:[%s821_s6 + $0x10] sm:$0xff] %v1288_v37   ;;  %1317 = vst [vmem:[%s821_s6 + $0x18] sm:$0xff] %v1293_v38  }
 0x22f   : > { %848 = vst [vmem:[#allocation9 + $0x50] sm:$0xff] %v746_v39  ;;  %849 = vst [vmem:[#allocation9 + $0x58] sm:$0xff] %v747_v40 }
 0x230   : > { %1318 = vst [vmem:[%s821_s6 + $0x20] sm:$0xff] %v1298_v41   ;;  %850 = vst [vmem:[#allocation9 + $0x60] sm:$0xff] %v748_v42 }
 0x231   : > { %851 = vst [vmem:[#allocation9 + $0x68] sm:$0xff] %v749_v43  ;;  %852 = vst [vmem:[#allocation9 + $0x70] sm:$0xff] %v750_v44 }
 0x232   : > { %1319 = vst [vmem:[%s821_s6 + $0x28] sm:$0xff] %v1303_v45   ;;  %853 = vst [vmem:[#allocation9 + $0x78] sm:$0xff] %v751_v46 }
 0x233   : > { %1320 = vst [vmem:[%s821_s6 + $0x30] sm:$0xff] %v1308_v47   ;;  %1321 = vst [vmem:[%s821_s6 + $0x38] sm:$0xff] %v1313_v48  }
 0x234 PF: > { %p1252_p3 = scmp.ne.s32.totalorder %s1751_s18, 2 }
 0x236   : > { %856 = sbr.rel (%p1252_p3) target bundleno = 924 (0x39c), region = 60 }
 0x23b   : > { %v857_v49 = vlaneseq }
 0x23d   : > { %v2008_v50 = vand.u32 127, %v857_v49 }
 0x23f   : > { %vm859_vm0 = vcmp.lt.s32.totalorder %v2008_v50, 6 }
 0x240   : > { %v860_v51 = vsel %vm859_vm0, %v1959_v60, -1e+30  ;;  %v862_v52 = vsel %vm859_vm0, %v1957_v58, -1e+30  ;;  %v861_v53 = vsel %vm859_vm0, %v1963_v0, -1e+30 }
 0x241   : > { %876 = vmax.xlane.f32.xlu0 %v860_v51  ;;  %880 = vmax.xlane.f32.xlu1 %v862_v52  ;;  %v863_v54 = vsel %vm859_vm0, %v1961_v62, -1e+30  ;;  %v864_v55 = vsel %vm859_vm0, %v1967_v4, -1e+30  ;;  %v865_v56 = vsel %vm859_vm0, %v1971_v8, -1e+30 }
 0x242   : > { %v866_v57 = vsel %vm859_vm0, %v1965_v2, -1e+30  ;;  %v867_v58 = vsel %vm859_vm0, %v1969_v6, -1e+30  ;;  %v868_v59 = vsel %vm859_vm0, %v1975_v12, -1e+30 }
 0x243   : > { %v869_v60 = vsel %vm859_vm0, %v1979_v16, -1e+30  ;;  %v870_v61 = vsel %vm859_vm0, %v1973_v10, -1e+30  ;;  %v871_v62 = vsel %vm859_vm0, %v1977_v14, -1e+30 }
 0x244   : > { %v2050_v63 = vsel %vm859_vm0, %v1983_v20, -1e+30  ;;  %v2055_v0 = vsel %vm859_vm0, %v1987_v24, -1e+30  ;;  %v2062_v1 = vsel %vm859_vm0, %v1981_v18, -1e+30 }
 0x245   : > { %878 = vmax.xlane.f32.xlu0 %v861_v53  ;;  %882 = vmax.xlane.f32.xlu1 %v863_v54  ;;  %v2067_v2 = vsel %vm859_vm0, %v1985_v22, -1e+30 }
 0x249   : > { %884 = vmax.xlane.f32.xlu0 %v864_v55  ;;  %886 = vmax.xlane.f32.xlu1 %v865_v56 }
 0x24d   : > { %888 = vmax.xlane.f32.xlu0 %v866_v57  ;;  %890 = vmax.xlane.f32.xlu1 %v867_v58 }
 0x251   : > { %892 = vmax.xlane.f32.xlu0 %v868_v59  ;;  %894 = vmax.xlane.f32.xlu1 %v869_v60 }
 0x255   : > { %896 = vmax.xlane.f32.xlu0 %v870_v61  ;;  %898 = vmax.xlane.f32.xlu1 %v871_v62 }
 0x259   : > { %900 = vmax.xlane.f32.xlu0 %v2050_v63  ;;  %902 = vmax.xlane.f32.xlu1 %v2055_v0 }
 0x25d   : > { %904 = vmax.xlane.f32.xlu0 %v2062_v1  ;;  %906 = vmax.xlane.f32.xlu1 %v2067_v2 }
 0x2ca   : > { %v877_v3 = vpop.xlane.xlu0 %876  ;;  %v881_v4 = vpop.xlane.xlu1 %880 }
 0x2cb   : > { %v2071_v5 = vsub.f32 %v860_v51, %v877_v3  ;;  %v2073_v6 = vsub.f32 %v862_v52, %v881_v4 }
 0x2cd   : > { %v924_v7 = vmul.f32 1.442695, %v2071_v5  ;;  %v928_v8 = vmul.f32 1.442695, %v2073_v6 }
 0x2ce   : > { %v879_v9 = vpop.xlane.xlu0 %878  ;;  %v883_v10 = vpop.xlane.xlu1 %882 }
 0x2cf   : > { %1529 = vpow2.f32 %v924_v7  ;;  %v2077_v11 = vsub.f32 %v861_v53, %v879_v9  ;;  %v2079_v12 = vsub.f32 %v863_v54, %v883_v10 }
 0x2d0   : > { %1531 = vpow2.f32 %v928_v8 }
 0x2d1   : > { %v926_v13 = vmul.f32 1.442695, %v2077_v11  ;;  %v930_v14 = vmul.f32 1.442695, %v2079_v12 }
 0x2d2   : > { %v885_v15 = vpop.xlane.xlu0 %884  ;;  %v887_v16 = vpop.xlane.xlu1 %886 }
 0x2d3   : > { %1533 = vpow2.f32 %v926_v13  ;;  %v2083_v17 = vsub.f32 %v864_v55, %v885_v15  ;;  %v2085_v18 = vsub.f32 %v865_v56, %v887_v16 }
 0x2d4   : > { %1535 = vpow2.f32 %v930_v14 }
 0x2d5   : > { %v932_v19 = vmul.f32 1.442695, %v2083_v17  ;;  %v934_v20 = vmul.f32 1.442695, %v2085_v18 }
 0x2d6   : > { %v889_v21 = vpop.xlane.xlu0 %888  ;;  %v891_v22 = vpop.xlane.xlu1 %890 }
 0x2d7   : > { %1537 = vpow2.f32 %v932_v19  ;;  %v2089_v23 = vsub.f32 %v866_v57, %v889_v21  ;;  %v2091_v24 = vsub.f32 %v867_v58, %v891_v22 }
 0x2d8   : > { %1539 = vpow2.f32 %v934_v20 }
 0x2d9   : > { %v936_v25 = vmul.f32 1.442695, %v2089_v23  ;;  %v938_v26 = vmul.f32 1.442695, %v2091_v24 }
 0x2da   : > { %v893_v27 = vpop.xlane.xlu0 %892  ;;  %v895_v28 = vpop.xlane.xlu1 %894 }
 0x2db   : > { %1541 = vpow2.f32 %v936_v25  ;;  %v2095_v29 = vsub.f32 %v868_v59, %v893_v27  ;;  %v2097_v30 = vsub.f32 %v869_v60, %v895_v28 }
 0x2dc   : > { %v1530_v31 = vpop.eup %1529  ;;  %1543 = vpow2.f32 %v938_v26 }
 0x2dd   : > { %v1532_v32 = vpop.eup %1531  ;;  %v940_v33 = vmul.f32 1.442695, %v2095_v29  ;;  %v942_v34 = vmul.f32 1.442695, %v2097_v30  ;;  %v956_v35 = vsel %vm859_vm0, %v1530_v31, 0.0 }
 0x2de   : > { %972 = vadd.xlane.f32.xlu0 %v956_v35  ;;  %v897_v36 = vpop.xlane.xlu0 %896  ;;  %v899_v37 = vpop.xlane.xlu1 %898  ;;  %v958_v40 = vsel %vm859_vm0, %v1532_v32, 0.0 }
 0x2df   : > { %1545 = vpow2.f32 %v940_v33  ;;  %v2103_v38 = vsub.f32 %v870_v61, %v897_v36  ;;  %v2105_v39 = vsub.f32 %v871_v62, %v899_v37 }
 0x2e0   : > { %v1534_v41 = vpop.eup %1533  ;;  %1547 = vpow2.f32 %v942_v34 }
 0x2e1   : > { %v1536_v42 = vpop.eup %1535  ;;  %v944_v43 = vmul.f32 1.442695, %v2103_v38  ;;  %v946_v44 = vmul.f32 1.442695, %v2105_v39  ;;  %v957_v45 = vsel %vm859_vm0, %v1534_v41, 0.0 }
 0x2e2   : > { %976 = vadd.xlane.f32.xlu0 %v958_v40  ;;  %974 = vadd.xlane.f32.xlu1 %v957_v45  ;;  %v901_v46 = vpop.xlane.xlu0 %900  ;;  %v903_v47 = vpop.xlane.xlu1 %902  ;;  %v959_v51 = vsel %vm859_vm0, %v1536_v42, 0.0 }
 0x2e3   : > { %1549 = vpow2.f32 %v944_v43  ;;  %v2114_v48 = vsub.f32 %v2050_v63, %v901_v46  ;;  %v2117_v49 = vsub.f32 %v2055_v0, %v903_v47 }
 0x2e4   : > { %v1538_v52 = vpop.eup %1537  ;;  %1551 = vpow2.f32 %v946_v44 }
 0x2e5   : > { %v1540_v53 = vpop.eup %1539  ;;  %v948_v54 = vmul.f32 1.442695, %v2114_v48  ;;  %v950_v55 = vmul.f32 1.442695, %v2117_v49  ;;  %v960_v56 = vsel %vm859_vm0, %v1538_v52, 0.0 }
 0x2e6   : > { %978 = vadd.xlane.f32.xlu1 %v959_v51  ;;  %980 = vadd.xlane.f32.xlu0 %v960_v56  ;;  %v905_v57 = vpop.xlane.xlu0 %904  ;;  %v907_v58 = vpop.xlane.xlu1 %906  ;;  %v961_v61 = vsel %vm859_vm0, %v1540_v53, 0.0 }
 0x2e7   : > { %1553 = vpow2.f32 %v948_v54  ;;  %v2126_v59 = vsub.f32 %v2062_v1, %v905_v57  ;;  %v2129_v60 = vsub.f32 %v2067_v2, %v907_v58 }
 0x2e8   : > { %v1542_v62 = vpop.eup %1541  ;;  %1555 = vpow2.f32 %v950_v55 }
 0x2e9   : > { %v1544_v63 = vpop.eup %1543  ;;  %v952_v0 = vmul.f32 1.442695, %v2126_v59  ;;  %v954_v3 = vmul.f32 1.442695, %v2129_v60  ;;  %v962_v4 = vsel %vm859_vm0, %v1542_v62, 0.0 }
 0x2ea   : > { %982 = vadd.xlane.f32.xlu1 %v961_v61  ;;  %984 = vadd.xlane.f32.xlu0 %v962_v4  ;;  %v963_v1 = vsel %vm859_vm0, %v1544_v63, 0.0 }
 0x2eb   : > { %1557 = vpow2.f32 %v952_v0 }
 0x2ec   : > { %v1546_v2 = vpop.eup %1545  ;;  %1559 = vpow2.f32 %v954_v3 }
 0x2ed   : > { %v1548_v7 = vpop.eup %1547  ;;  %v964_v8 = vsel %vm859_vm0, %v1546_v2, 0.0 }
 0x2ee   : > { %986 = vadd.xlane.f32.xlu1 %v963_v1  ;;  %988 = vadd.xlane.f32.xlu0 %v964_v8  ;;  %v965_v9 = vsel %vm859_vm0, %v1548_v7, 0.0 }
 0x2f0   : > { %v1550_v10 = vpop.eup %1549 }
 0x2f1   : > { %v1552_v13 = vpop.eup %1551  ;;  %v966_v14 = vsel %vm859_vm0, %v1550_v10, 0.0 }
 0x2f2   : > { %990 = vadd.xlane.f32.xlu1 %v965_v9  ;;  %992 = vadd.xlane.f32.xlu0 %v966_v14  ;;  %v967_v15 = vsel %vm859_vm0, %v1552_v13, 0.0 }
 0x2f4   : > { %v1554_v16 = vpop.eup %1553 }
 0x2f5   : > { %v1556_v19 = vpop.eup %1555  ;;  %v968_v20 = vsel %vm859_vm0, %v1554_v16, 0.0 }
 0x2f6   : > { %994 = vadd.xlane.f32.xlu1 %v967_v15  ;;  %996 = vadd.xlane.f32.xlu0 %v968_v20  ;;  %v969_v21 = vsel %vm859_vm0, %v1556_v19, 0.0 }
 0x2f8   : > { %v1558_v22 = vpop.eup %1557 }
 0x2f9   : > { %v1560_v25 = vpop.eup %1559  ;;  %v970_v26 = vsel %vm859_vm0, %v1558_v22, 0.0 }
 0x2fa   : > { %998 = vadd.xlane.f32.xlu1 %v969_v21  ;;  %1000 = vadd.xlane.f32.xlu0 %v970_v26  ;;  %v971_v27 = vsel %vm859_vm0, %v1560_v25, 0.0 }
 0x2fe   : > { %1002 = vadd.xlane.f32.xlu1 %v971_v27 }
 0x367   : > { %v973_v28 = vpop.xlane.xlu0 %972 }
 0x368   : > { %1561 = vlog2.f32 %v973_v28 }
 0x36b   : > { %v975_v31 = vpop.xlane.xlu1 %974  ;;  %v977_v32 = vpop.xlane.xlu0 %976 }
 0x36c   : > { %1563 = vlog2.f32 %v975_v31 }
 0x36d   : > { %1565 = vlog2.f32 %v977_v32 }
 0x36f   : > { %v979_v33 = vpop.xlane.xlu1 %978  ;;  %v981_v34 = vpop.xlane.xlu0 %980 }
 0x370   : > { %1567 = vlog2.f32 %v979_v33 }
 0x371   : > { %1569 = vlog2.f32 %v981_v34 }
 0x373   : > { %v983_v35 = vpop.xlane.xlu1 %982  ;;  %v985_v36 = vpop.xlane.xlu0 %984 }
 0x374   : > { %1571 = vlog2.f32 %v983_v35 }
 0x375   : > { %v1562_v37 = vpop.eup %1561  ;;  %1573 = vlog2.f32 %v985_v36 }
 0x376   : > { %v1005_v40 = vmul.f32 0.6931472, %v1562_v37 }
 0x377   : > { %v987_v41 = vpop.xlane.xlu1 %986  ;;  %v989_v42 = vpop.xlane.xlu0 %988 }
 0x378   : > { %v1036_v43 = vsub.f32 %v2071_v5, %v1005_v40  ;;  %1575 = vlog2.f32 %v987_v41 }
 0x379   : > { %v1564_v44 = vpop.eup %1563  ;;  %1577 = vlog2.f32 %v989_v42 }
 0x37a   : > { %v1566_v45 = vpop.eup %1565  ;;  %v1052_v46 = vsel %vm859_vm0, %v1036_v43, 0.0  ;;  %v1007_v47 = vmul.f32 0.6931472, %v1564_v44 }
 0x37b   : > { %1068 = vst [vmem:[#allocation9] sm:$0xff] %v1052_v46  ;;  %v1009_v51 = vmul.f32 0.6931472, %v1566_v45  ;;  %v991_v52 = vpop.xlane.xlu1 %990  ;;  %v993_v53 = vpop.xlane.xlu0 %992 }
 0x37c   : > { %v1037_v54 = vsub.f32 %v2077_v11, %v1007_v47  ;;  %1579 = vlog2.f32 %v991_v52 }
 0x37d   : > { %v1568_v55 = vpop.eup %1567  ;;  %v1038_v56 = vsub.f32 %v2073_v6, %v1009_v51  ;;  %1581 = vlog2.f32 %v993_v53 }
 0x37e   : > { %v1570_v5 = vpop.eup %1569  ;;  %v1053_v57 = vsel %vm859_vm0, %v1037_v54, 0.0  ;;  %v1011_v58 = vmul.f32 0.6931472, %v1568_v55 }
 0x37f   : > { %1069 = vst [vmem:[#allocation9 + $0x8] sm:$0xff] %v1053_v57  ;;  %v1054_v61 = vsel %vm859_vm0, %v1038_v56, 0.0  ;;  %v1013_v62 = vmul.f32 0.6931472, %v1570_v5  ;;  %v995_v63 = vpop.xlane.xlu1 %994  ;;  %v997_v0 = vpop.xlane.xlu0 %996 }
 0x380   : > { %1070 = vst [vmem:[#allocation9 + $0x10] sm:$0xff] %v1054_v61  ;;  %v1039_v11 = vsub.f32 %v2079_v12, %v1011_v58  ;;  %1583 = vlog2.f32 %v995_v63 }
 0x381   : > { %v1572_v3 = vpop.eup %1571  ;;  %v1040_v6 = vsub.f32 %v2083_v17, %v1013_v62  ;;  %1585 = vlog2.f32 %v997_v0 }
 0x382   : > { %v1574_v4 = vpop.eup %1573  ;;  %v1055_v1 = vsel %vm859_vm0, %v1039_v11, 0.0  ;;  %v1015_v2 = vmul.f32 0.6931472, %v1572_v3 }
 0x383   : > { %1071 = vst [vmem:[#allocation9 + $0x18] sm:$0xff] %v1055_v1  ;;  %v1056_v7 = vsel %vm859_vm0, %v1040_v6, 0.0  ;;  %v1017_v8 = vmul.f32 0.6931472, %v1574_v4  ;;  %v999_v9 = vpop.xlane.xlu1 %998  ;;  %v1001_v10 = vpop.xlane.xlu0 %1000 }
 0x384   : > { %1072 = vst [vmem:[#allocation9 + $0x20] sm:$0xff] %v1056_v7  ;;  %v1041_v12 = vsub.f32 %v2085_v18, %v1015_v2  ;;  %1587 = vlog2.f32 %v999_v9 }
 0x385   : > { %v1576_v13 = vpop.eup %1575  ;;  %v1042_v17 = vsub.f32 %v2089_v23, %v1017_v8  ;;  %1589 = vlog2.f32 %v1001_v10 }
 0x386   : > { %v1578_v14 = vpop.eup %1577  ;;  %v1057_v15 = vsel %vm859_vm0, %v1041_v12, 0.0  ;;  %v1019_v16 = vmul.f32 0.6931472, %v1576_v13 }
 0x387   : > { %1073 = vst [vmem:[#allocation9 + $0x28] sm:$0xff] %v1057_v15  ;;  %v1058_v19 = vsel %vm859_vm0, %v1042_v17, 0.0  ;;  %v1021_v20 = vmul.f32 0.6931472, %v1578_v14  ;;  %v1003_v21 = vpop.xlane.xlu1 %1002 }
 0x388   : > { %1074 = vst [vmem:[#allocation9 + $0x30] sm:$0xff] %v1058_v19  ;;  %v1043_v22 = vsub.f32 %v2091_v24, %v1019_v16  ;;  %1591 = vlog2.f32 %v1003_v21 }
 0x389   : > { %v1580_v18 = vpop.eup %1579  ;;  %v1044_v25 = vsub.f32 %v2095_v29, %v1021_v20 }
 0x38a   : > { %v1582_v23 = vpop.eup %1581  ;;  %v1059_v26 = vsel %vm859_vm0, %v1043_v22, 0.0  ;;  %v1023_v27 = vmul.f32 0.6931472, %v1580_v18 }
 0x38b   : > { %1075 = vst [vmem:[#allocation9 + $0x38] sm:$0xff] %v1059_v26  ;;  %v1060_v28 = vsel %vm859_vm0, %v1044_v25, 0.0  ;;  %v1025_v31 = vmul.f32 0.6931472, %v1582_v23 }
 0x38c   : > { %1076 = vst [vmem:[#allocation9 + $0x40] sm:$0xff] %v1060_v28  ;;  %v1045_v32 = vsub.f32 %v2097_v30, %v1023_v27 }
 0x38d   : > { %v1584_v33 = vpop.eup %1583  ;;  %v1046_v24 = vsub.f32 %v2103_v38, %v1025_v31 }
 0x38e   : > { %v1586_v34 = vpop.eup %1585  ;;  %v1061_v29 = vsel %vm859_vm0, %v1045_v32, 0.0  ;;  %v1027_v35 = vmul.f32 0.6931472, %v1584_v33 }
 0x38f   : > { %1077 = vst [vmem:[#allocation9 + $0x48] sm:$0xff] %v1061_v29  ;;  %v1062_v36 = vsel %vm859_vm0, %v1046_v24, 0.0  ;;  %v1029_v37 = vmul.f32 0.6931472, %v1586_v34 }
 0x390   : > { %1078 = vst [vmem:[#allocation9 + $0x50] sm:$0xff] %v1062_v36  ;;  %v1047_v40 = vsub.f32 %v2105_v39, %v1027_v35 }
 0x391   : > { %v1588_v41 = vpop.eup %1587  ;;  %v1048_v42 = vsub.f32 %v2114_v48, %v1029_v37 }
 0x392   : > { %v1590_v30 = vpop.eup %1589  ;;  %v1063_v38 = vsel %vm859_vm0, %v1047_v40, 0.0  ;;  %v1031_v43 = vmul.f32 0.6931472, %v1588_v41 }
 0x393   : > { %1079 = vst [vmem:[#allocation9 + $0x58] sm:$0xff] %v1063_v38  ;;  %v1064_v44 = vsel %vm859_vm0, %v1048_v42, 0.0  ;;  %v1033_v45 = vmul.f32 0.6931472, %v1590_v30 }
 0x394   : > { %1080 = vst [vmem:[#allocation9 + $0x60] sm:$0xff] %v1064_v44  ;;  %v1049_v46 = vsub.f32 %v2117_v49, %v1031_v43 }
 0x395   : > { %v1592_v47 = vpop.eup %1591  ;;  %v1050_v51 = vsub.f32 %v2126_v59, %v1033_v45 }
 0x396   : > { %v1065_v39 = vsel %vm859_vm0, %v1049_v46, 0.0  ;;  %v1035_v48 = vmul.f32 0.6931472, %v1592_v47 }
 0x397   : > { %1081 = vst [vmem:[#allocation9 + $0x68] sm:$0xff] %v1065_v39  ;;  %v1066_v52 = vsel %vm859_vm0, %v1050_v51, 0.0 }
 0x398   : > { %1082 = vst [vmem:[#allocation9 + $0x70] sm:$0xff] %v1066_v52  ;;  %v1051_v53 = vsub.f32 %v2129_v60, %v1035_v48 }
 0x39a   : > { %v1067_v54 = vsel %vm859_vm0, %v1051_v53, 0.0 }
 0x39b   : > { %1083 = vst [vmem:[#allocation9 + $0x78] sm:$0xff] %v1067_v54 }
 0x39c PF: > { %p1448_p11 = scmp.eq.s32.totalorder %s1823_s21, 2  ;;  %s1766_s18 = smov [#allocation9]  }
 0x39d   : > { %s1093_s7 = sshll.u32 %s1766_s18, 4  ;;  %s1094_s7 = int_to_ptr.vmem [resolvable:$true] %s1093_s7 }
 0x39e   : > { %s1673_s22 = scalar_lea.vmem %s1094_s7, 2048  ;;  %p1680_p4 = scmp.lt.s32.totalorder %s1094_s7, %s1094_s7 }
 0x39f   : > { %p1674_p0 = scmp.ne.s32.totalorder %s1094_s7, %s1673_s22  ;;  %p1681_p13 = scmp.lt.s32.totalorder %s1673_s22, %s1673_s22 }
 0x3a1   : > { %p1675_p1 = pnand %p1674_p0, %p1448_p11  ;;  %p1682_p6 = por %p1681_p13, %p1680_p4 }
 0x3a3   : > { %p1676_p2 = pneg %p1675_p1 }
 0x3a5   : > { %p1683_p10 = pnand %p1682_p6, %p1676_p2 }
 0x3a7   : > { %1686 = shalt.err (!%p1683_p10)
}
 0x3a8   : > { %s1767_s9 = smov 128   ;;  %s1768_s10 = smov 8  }
 0x3a9   : > { %1429 = dma.vmem_to_hbm [thread:$0]  (%p1448_p11), %s1094_s7, 2048, %s2237_s4, [#allocation5], %s1767_s9, %s1767_s9, %s1768_s10  }
 0x3aa   : > { %1734 = dma.done.wait (%p1448_p11), [#allocation5], 2048  }
 0x3ab   : > { %1736 = vsyncadd (%p1448_p11), [#allocation5], 4294965248 }
 0x3ac PF: > { %s17_s20 = sadd.s32 1, %s1759_s20   ;;  %s2249_s15 = smov %s1743_s16 }
 0x3ad   : > { %p14_p8 = scmp.ge.s32.totalorder %s17_s20, 5   ;;  %s2250_s16 = smov %s1747_s17 }
 0x3ae   : > { %s2251_s17 = smov %s1892_s8  ;;  %s2252_s18 = smov %s1755_s19 }
 0x3af   : > { %s2253_s19 = smov %s2255_s12  ;;  %16 = sbr.rel (!%p14_p8) target bundleno = 5 (0x5), region = 99 }
 0x3b4   :  { %1109 = vsyncpa [#allocation4], 1 }
 0x3b5   :  { %1111 = vsyncpa [#allocation4 + $0x1], 1 }
 0x3b6   :  { %1112 = vsyncpa [#allocation7], 1 }
 0x3b7   :  { %1113 = vsyncpa [#allocation5], 1 }
 0x3b8   :  { %1115 = vsyncpa [#allocation5 + $0x1], 1 }

</bundles_post_ra>
